<compile_context>
chip_gen: v7x
topology: tpu7x:2x2x1
jax: 0.10.0
libtpu: 0.0.40
codegen_flags: <defaults>
</compile_context>

<pallas_src>
import math

import jax
import jax.numpy as jnp
import numpy as np
from jax.experimental import pallas as pl
from jax.experimental.pallas import tpu as pltpu


_RESIDENT_FEAT_MAX = 16 * 1024 * 1024   # cap on a fully VMEM-resident x / h


def _round_up(x, m):
    return ((x + m - 1) // m) * m


def _tile_candidates(n_pad, cap):
    """Lane-aligned (multiple-of-128) divisors of n_pad up to `cap`, biggest first."""
    cands = [t for t in range(128, min(n_pad, cap) + 1, 128) if n_pad % t == 0]
    return sorted(cands, reverse=True) if cands else [n_pad]


def _buffered(count):
    """pl.Buffered(count) if this JAX supports pipeline_mode hints, else None."""
    try:
        return pl.Buffered(buffer_count=count)
    except Exception:
        try:
            return pl.Buffered(count)
        except Exception:
            return None


def _spec(block_shape, index_map, mode=None):
    if mode is not None:
        return pl.BlockSpec(block_shape, index_map, pipeline_mode=mode)
    return pl.BlockSpec(block_shape, index_map)


def _vmem_info():
    """(physical VMEM bytes, scoped vmem_limit to request)."""
    try:
        phys = int(pltpu.get_tpu_info().vmem_capacity_bytes)
    except Exception:
        phys = 64 * 1024 * 1024          # conservative default (v7x-sized)
    return phys, (phys * 3) // 4         # 48 MiB on v7x, 96 MiB on v5e/v6e


def _select_tiles(n_pad, feat_cols, w_bytes, cd_bytes, adj_itemsize,
                  adj_buffers, out_cols, budget, single_buffer_resident):
    """Pick (tm, tk, feat_resident): the biggest tiles whose working set fits VMEM."""
    res_copies = 1 if single_buffer_resident else 2
    tm_cands = _tile_candidates(n_pad, 512)
    tk_cands = _tile_candidates(n_pad, 2048)
    for feat_resident in (True, False):
        feat_fixed = res_copies * n_pad * feat_cols * cd_bytes
        if feat_resident and feat_fixed > min(budget // 3, _RESIDENT_FEAT_MAX):
            continue
        best = None
        for tm in tm_cands:
            for tk in tk_cands:
                feat_bytes = feat_fixed if feat_resident else 2 * tk * feat_cols * cd_bytes
                use = (adj_buffers * tm * tk * adj_itemsize   # streamed adj tiles
                       + feat_bytes                           # x / h (resident or streamed)
                       + res_copies * w_bytes                 # resident W
                       + tm * feat_cols * 4                   # f32 accumulator scratch
                       + 2 * tm * out_cols * 4)               # double-buffered output tile
                if use > budget:
                    continue
                # Biggest tile wins; mild bonus for an even row-tile count
                # (v7x: 2 TensorCores share the "parallel" row axis).
                score = tm * tk * (5 if (n_pad // tm) % 2 == 0 else 4)
                if best is None or score > best[0]:
                    best = (score, tm, tk)
        if best is not None:
            return best[1], best[2], feat_resident
    # Even the smallest tiles blow the soft budget; fall back and let Mosaic cope.
    return tm_cands[-1], tk_cands[-1], False


# ---------------------------------------------------------------------------
# Kernels
# ---------------------------------------------------------------------------
def _make_agg_kernel(tk, feat_resident, compute_dtype, project):
    """Aggregation kernel.

    Each grid step: acc += adj_tile @ feat_tile (MXU, f32 accumulation); the
    adjacency tile is cast from its native dtype to `compute_dtype` in-kernel.
    On the last reduction step the row tile is finalized:
        project=True : out = acc @ W + bias   (W kept in f32 -> no extra rounding)
        project=False: out = acc + bias
    """

    def _body(adj_ref, f_ref, o_ref, acc_ref, finalize):
        k = pl.program_id(1)

        @pl.when(k == 0)
        def _init():
            acc_ref[...] = jnp.zeros_like(acc_ref)

        if feat_resident:
            # Features are fully VMEM-resident: slice the current k window.
            f = f_ref[pl.ds(pl.multiple_of(k * tk, tk), tk), :]
        else:
            f = f_ref[...]
        a = adj_ref[...].astype(compute_dtype)
        f = f.astype(compute_dtype)
        acc_ref[...] += jnp.dot(a, f, preferred_element_type=jnp.float32)

        @pl.when(k == pl.num_programs(1) - 1)
        def _finalize():
            o_ref[...] = finalize(acc_ref[...]).astype(o_ref.dtype)

    if project:
        def kernel(adj_ref, f_ref, w_ref, b_ref, o_ref, acc_ref):
            _body(adj_ref, f_ref, o_ref, acc_ref,
                  lambda acc: jnp.dot(acc, w_ref[...],
                                      preferred_element_type=jnp.float32) + b_ref[...])
    else:
        def kernel(adj_ref, f_ref, b_ref, o_ref, acc_ref):
            _body(adj_ref, f_ref, o_ref, acc_ref, lambda acc: acc + b_ref[...])
    return kernel


def _xw_kernel(x_ref, w_ref, o_ref):
    """Row-tiled feature transform h = x @ W (used when in_features > out_features)."""
    o_ref[...] = jnp.dot(x_ref[...], w_ref[...].astype(x_ref.dtype),
                         preferred_element_type=jnp.float32).astype(o_ref.dtype)


# ---------------------------------------------------------------------------
# Pallas-call builders
# ---------------------------------------------------------------------------
def _aggregate(adj_p, feat_p, w_p, b_p, *, project, out_cols, compute_dtype,
               adj_buffers, budget, vmem_limit, res_mode, adj_mode):
    n_pad = adj_p.shape[0]
    feat_cols = feat_p.shape[1]
    cd_bytes = np.dtype(compute_dtype).itemsize
    w_bytes = int(w_p.size) * w_p.dtype.itemsize if project else 0

    tm, tk, feat_res = _select_tiles(
        n_pad, feat_cols, w_bytes, cd_bytes, adj_p.dtype.itemsize,
        adj_buffers, out_cols, budget,
        single_buffer_resident=res_mode is not None)

    kernel = _make_agg_kernel(tk=tk, feat_resident=feat_res,
                              compute_dtype=compute_dtype, project=project)

    in_specs = [_spec((tm, tk), lambda i, k: (i, k), adj_mode)]      # adj stream
    operands = [adj_p]
    if feat_res:
        in_specs.append(_spec((n_pad, feat_cols), lambda i, k: (0, 0), res_mode))
    else:
        in_specs.append(_spec((tk, feat_cols), lambda i, k: (k, 0)))
    operands.append(feat_p)
    if project:
        # NOTE: for very large W on v7x this should become an output-column
        # grid axis; for GCN-typical feature widths resident W is tiny.
        in_specs.append(_spec((feat_cols, out_cols), lambda i, k: (0, 0), res_mode))
        operands.append(w_p)
    in_specs.append(_spec((1, out_cols), lambda i, k: (0, 0), res_mode))  # bias
    operands.append(b_p)

    return pl.pallas_call(
        kernel,
        out_shape=jax.ShapeDtypeStruct((n_pad, out_cols), jnp.float32),
        grid_spec=pltpu.PrefetchScalarGridSpec(
            num_scalar_prefetch=0,
            grid=(n_pad // tm, n_pad // tk),
            in_specs=in_specs,
            out_specs=pl.BlockSpec((tm, out_cols), lambda i, k: (i, 0)),
            scratch_shapes=[pltpu.VMEM((tm, feat_cols), jnp.float32)]),
        compiler_params=pltpu.CompilerParams(
            dimension_semantics=("parallel", "arbitrary"),
            vmem_limit_bytes=vmem_limit),
    )(*operands)


def gcn_layer(x, w, adj, bias=None, *, compute_dtype=jnp.bfloat16):
    """GCN layer forward pass:  out = adj @ (x @ w) + bias.

    x:    [N, in_features]
    w:    [in_features, out_features]
    adj:  [N, N] dense (normalized) adjacency
    bias: [out_features] or None
    compute_dtype: MXU operand dtype for the aggregation (accumulation is f32).
    Returns [N, out_features] float32.
    """
    n, in_f = x.shape
    in_f2, out_f = w.shape
    assert in_f == in_f2
    assert adj.shape == (n, n)

    n_pad = _round_up(n, 128)
    fi_pad = _round_up(in_f, 128)
    fo_pad = _round_up(out_f, 128)

    # Adjacency is the dominant HBM stream: keep it in its native dtype (the
    # kernel casts per-tile) and only pad when N isn't already lane-aligned.
    adj_p = adj if n_pad == n else jnp.pad(adj, ((0, n_pad - n), (0, n_pad - n)))

    # Small operands: pad/cast in the wrapper (negligible traffic).
    x_p = jnp.pad(x.astype(compute_dtype), ((0, n_pad - n), (0, fi_pad - in_f)))
    w_p = jnp.pad(w.astype(jnp.float32), ((0, fi_pad - in_f), (0, fo_pad - out_f)))
    if bias is None:
        b_p = jnp.zeros((1, fo_pad), jnp.float32)
    else:
        b_p = jnp.pad(bias.astype(jnp.float32).reshape(1, out_f),
                      ((0, 0), (0, fo_pad - out_f)))

    phys_vmem, vmem_limit = _vmem_info()
    budget = (vmem_limit * 4) // 5
    # Deeper adjacency pipeline on 128-MiB-VMEM parts (v5e/v6e); 2 on v7x.
    adj_buffers = 3 if phys_vmem >= 100 * 1024 * 1024 else 2

    def _forward(with_modes):
        res_mode = _buffered(1) if with_modes else None
        adj_mode = _buffered(adj_buffers) if (with_modes and adj_buffers != 2) else None
        if in_f <= out_f:
            # Aggregate the narrow x first, project (+bias) once per row tile.
            return _aggregate(adj_p, x_p, w_p, b_p, project=True, out_cols=fo_pad,
                              compute_dtype=compute_dtype, adj_buffers=adj_buffers,
                              budget=budget, vmem_limit=vmem_limit,
                              res_mode=res_mode, adj_mode=adj_mode)
        # Project down to the narrower out_features first, then aggregate.
        tmx = _tile_candidates(n_pad, 512)[0]
        h = pl.pallas_call(
            _xw_kernel,
            out_shape=jax.ShapeDtypeStruct((n_pad, fo_pad), compute_dtype),
            grid_spec=pltpu.PrefetchScalarGridSpec(
                num_scalar_prefetch=0, grid=(n_pad // tmx,),
                in_specs=[_spec((tmx, fi_pad), lambda i: (i, 0)),
                          _spec((fi_pad, fo_pad), lambda i: (0, 0), res_mode)],
                out_specs=pl.BlockSpec((tmx, fo_pad), lambda i: (i, 0))),
            compiler_params=pltpu.CompilerParams(
                dimension_semantics=("parallel",), vmem_limit_bytes=vmem_limit),
        )(x_p, w_p)
        return _aggregate(adj_p, h, None, b_p, project=False, out_cols=fo_pad,
                          compute_dtype=compute_dtype, adj_buffers=adj_buffers,
                          budget=budget, vmem_limit=vmem_limit,
                          res_mode=res_mode, adj_mode=adj_mode)

    try:
        out = _forward(True)
    except Exception:
        # pipeline_mode hints unsupported on this JAX/Mosaic -> plain double-buffered specs.
        out = _forward(False)

    return out[:n, :out_f]


# ---------------------------------------------------------------------------
# Parameter init (mirrors the PyTorch module's reset_parameters) and test data
# ---------------------------------------------------------------------------
def init_params(key, in_features, out_features, use_bias=True):
    kw, kb = jax.random.split(key)
    gain = math.sqrt(2.0)  # calculate_gain('relu')
    limit = gain * math.sqrt(6.0 / (in_features + out_features))
    w = jax.random.uniform(kw, (in_features, out_features), jnp.float32,
                           minval=-limit, maxval=limit)
    bias = None
    if use_bias:
        std = 1.0 / math.sqrt(out_features)
        bias = jax.random.uniform(kb, (out_features,), jnp.float32,
                                  minval=-std, maxval=std)
    return w, bias


def _make_adj(key, n, density):
    a = (jax.random.uniform(key, (n, n)) < density).astype(jnp.float32)
    a = jnp.maximum(a, a.T) + jnp.eye(n, dtype=jnp.float32)
    return a / jnp.sum(a, axis=1, keepdims=True)


if __name__ == "__main__":
    key = jax.random.PRNGKey(0)
    k_x, k_adj, k_p, k_x2, k_adj2, k_p2, k_x3, k_adj3, k_p3 = jax.random.split(key, 9)

    # ---- Case 1: in_features < out_features (aggregate-then-project path) ----
    N, IN_F, OUT_F = 16, 32, 64
    x = jax.random.normal(k_x, (N, IN_F), dtype=jnp.float32)
    adj = _make_adj(k_adj, N, 0.3)
    w, bias = init_params(k_p, IN_F, OUT_F, use_bias=True)
    ref = jnp.dot(adj, jnp.dot(x, w, precision="highest"),
                  precision="highest") + bias[None, :]

    out_bf16 = jax.block_until_ready(gcn_layer(x, w, adj, bias))
    assert out_bf16.shape == (N, OUT_F)
    assert jnp.allclose(out_bf16, ref, atol=0.15, rtol=0.05), "bf16 path mismatch"

    out_f32 = jax.block_until_ready(
        gcn_layer(x, w, adj, bias, compute_dtype=jnp.float32))
    assert jnp.allclose(out_f32, ref, atol=1e-3, rtol=1e-3), "f32 path mismatch"

    # ---- Case 2: in_features > out_features (transform-then-aggregate path), ----
    # ----          N=300 -> padded to 384.                                     ----
    N2, IN2, OUT2 = 300, 64, 32
    x2 = jax.random.normal(k_x2, (N2, IN2), dtype=jnp.float32)
    adj2 = _make_adj(k_adj2, N2, 0.05)
    w2, bias2 = init_params(k_p2, IN2, OUT2, use_bias=True)
    ref2 = jnp.dot(adj2, jnp.dot(x2, w2, precision="highest"),
                   precision="highest") + bias2[None, :]
    out2 = jax.block_until_ready(
        gcn_layer(x2, w2, adj2, bias2, compute_dtype=jnp.float32))
    assert out2.shape == (N2, OUT2)
    assert jnp.allclose(out2, ref2, atol=1e-3, rtol=1e-3), "transform-then-aggregate mismatch"

    # ---- Case 3: lane-aligned N (no adjacency pad prologue), multi row-tile / ----
    # ----          multi k-tile grid with VMEM-resident x sliced per k step.   ----
    N3, IN3, OUT3 = 2304, 32, 64
    x3 = jax.random.normal(k_x3, (N3, IN3), dtype=jnp.float32)
    adj3 = _make_adj(k_adj3, N3, 0.01)
    w3, bias3 = init_params(k_p3, IN3, OUT3, use_bias=True)
    ref3 = jnp.dot(adj3, jnp.dot(x3, w3, precision="highest"),
                   precision="highest") + bias3[None, :]
    out3 = jax.block_until_ready(
        gcn_layer(x3, w3, adj3, bias3, compute_dtype=jnp.float32))
    assert out3.shape == (N3, OUT3)
    assert jnp.allclose(out3, ref3, atol=1e-3, rtol=1e-3), "tiled resident-x path mismatch"

    print("KERNEL_OK")
</pallas_src>

<mosaic_0001>
module attributes {stable_mosaic.version = 11 : i64} {
  func.func @kernel(%arg0: i32, %arg1: i32, %arg2: memref<128x128xf32, #tpu.memory_space<vmem>>, %arg3: memref<128x128xbf16, #tpu.memory_space<vmem>>, %arg4: memref<128x128xf32, #tpu.memory_space<vmem>>, %arg5: memref<1x128xf32, #tpu.memory_space<vmem>>, %arg6: memref<128x128xf32, #tpu.memory_space<vmem>>, %arg7: memref<128x128xf32, #tpu.memory_space<vmem>>) attributes {dimension_semantics = [#tpu.dimension_semantics<parallel>, #tpu.dimension_semantics<arbitrary>], iteration_bounds = array<i64: 1, 1>, scalar_prefetch = 0 : i64, scratch_operands = 1 : i64, tpu.core_type = #tpu.core_type<tc>, window_params = [{transform_indices = @transform_0, window_bounds = array<i64: 128, 128>}, {pipeline_mode = #tpu.pipeline_mode<synchronous>, transform_indices = @transform_1, window_bounds = array<i64: 128, 128>}, {pipeline_mode = #tpu.pipeline_mode<synchronous>, transform_indices = @transform_2, window_bounds = array<i64: 128, 128>}, {pipeline_mode = #tpu.pipeline_mode<synchronous>, transform_indices = @transform_3, window_bounds = array<i64: 1, 128>}, {transform_indices = @transform_4, window_bounds = array<i64: 128, 128>}]} {
    %c0_i32 = arith.constant 0 : i32
    %0 = arith.cmpi eq, %arg1, %c0_i32 : i32
    %1 = arith.extui %0 : i1 to i32
    %c0_i32_0 = arith.constant 0 : i32
    %2 = arith.cmpi ne, %1, %c0_i32_0 : i32
    scf.if %2 {
      %cst_9 = arith.constant 0.000000e+00 : f32
      %16 = vector.broadcast %cst_9 : f32 to vector<128x128xf32>
      %c0_10 = arith.constant 0 : index
      %c0_11 = arith.constant 0 : index
      %17 = vector.load %arg7[%c0_10, %c0_11] : memref<128x128xf32, #tpu.memory_space<vmem>>, vector<128x128xf32>
      tpu.vector_store %arg7[%c0_10, %c0_11], %16 {strides = array<i32>} : memref<128x128xf32, #tpu.memory_space<vmem>>, vector<128x128xf32>,
    } else {
    }
    %c128_i32 = arith.constant 128 : i32
    %3 = arith.muli %arg1, %c128_i32 : i32
    %4 = tpu.assume_multiple %3, 128 : i32
    %5 = arith.index_cast %4 : i32 to index
    %c0 = arith.constant 0 : index
    %6 = vector.load %arg3[%5, %c0] : memref<128x128xbf16, #tpu.memory_space<vmem>>, vector<128x128xbf16>
    %c0_1 = arith.constant 0 : index
    %c0_2 = arith.constant 0 : index
    %7 = vector.load %arg2[%c0_1, %c0_2] : memref<128x128xf32, #tpu.memory_space<vmem>>, vector<128x128xf32>
    %8 = arith.truncf %7 : vector<128x128xf32> to vector<128x128xbf16>
    %c0_3 = arith.constant 0 : index
    %c0_4 = arith.constant 0 : index
    %9 = vector.load %arg7[%c0_3, %c0_4] : memref<128x128xf32, #tpu.memory_space<vmem>>, vector<128x128xf32>
    %cst = arith.constant dense<0.000000e+00> : vector<128x128xf32>
    %10 = tpu.matmul %8, %6, %cst {dimension_numbers = #tpu.dot_dimension_numbers<[1], [0], [0], [1], [0, 0, 1, 1], [], []>} : vector<128x128xbf16>, vector<128x128xbf16>, vector<128x128xf32> -> vector<128x128xf32>
    %11 = arith.addf %9, %10 : vector<128x128xf32>
    %c0_5 = arith.constant 0 : index
    %c0_6 = arith.constant 0 : index
    %12 = vector.load %arg7[%c0_5, %c0_6] : memref<128x128xf32, #tpu.memory_space<vmem>>, vector<128x128xf32>
    tpu.vector_store %arg7[%c0_5, %c0_6], %11 {strides = array<i32>} : memref<128x128xf32, #tpu.memory_space<vmem>>, vector<128x128xf32>,
    %c0_i32_7 = arith.constant 0 : i32
    %13 = arith.cmpi eq, %arg1, %c0_i32_7 : i32
    %14 = arith.extui %13 : i1 to i32
    %c0_i32_8 = arith.constant 0 : i32
    %15 = arith.cmpi ne, %14, %c0_i32_8 : i32
    scf.if %15 {
      %c0_9 = arith.constant 0 : index
      %c0_10 = arith.constant 0 : index
      %16 = vector.load %arg7[%c0_9, %c0_10] : memref<128x128xf32, #tpu.memory_space<vmem>>, vector<128x128xf32>
      %c0_11 = arith.constant 0 : index
      %c0_12 = arith.constant 0 : index
      %17 = vector.load %arg4[%c0_11, %c0_12] : memref<128x128xf32, #tpu.memory_space<vmem>>, vector<128x128xf32>
      %cst_13 = arith.constant dense<0.000000e+00> : vector<128x128xf32>
      %18 = tpu.matmul %16, %17, %cst_13 {dimension_numbers = #tpu.dot_dimension_numbers<[1], [0], [0], [1], [0, 0, 1, 1], [], []>} : vector<128x128xf32>, vector<128x128xf32>, vector<128x128xf32> -> vector<128x128xf32>
      %c0_14 = arith.constant 0 : index
      %c0_15 = arith.constant 0 : index
      %19 = vector.load %arg5[%c0_14, %c0_15] : memref<1x128xf32, #tpu.memory_space<vmem>>, vector<1x128xf32>
      %20 = vector.broadcast %19 : vector<1x128xf32> to vector<128x128xf32>
      %21 = arith.addf %18, %20 : vector<128x128xf32>
      %c0_16 = arith.constant 0 : index
      %c0_17 = arith.constant 0 : index
      %22 = vector.load %arg6[%c0_16, %c0_17] : memref<128x128xf32, #tpu.memory_space<vmem>>, vector<128x128xf32>
      tpu.vector_store %arg6[%c0_16, %c0_17], %21 {strides = array<i32>} : memref<128x128xf32, #tpu.memory_space<vmem>>, vector<128x128xf32>,
    } else {
    }
    return
  }
  func.func @transform_0(%arg0: i32, %arg1: i32) -> (i32, i32) {
    %c0_i32 = arith.constant 0 : i32
    return %arg0, %arg1 : i32, i32
  }
  func.func @transform_1(%arg0: i32, %arg1: i32) -> (i32, i32) {
    %c0_i32 = arith.constant 0 : i32
    %c0_i32_0 = arith.constant 0 : i32
    %c0_i32_1 = arith.constant 0 : i32
    return %c0_i32, %c0_i32_0 : i32, i32
  }
  func.func @transform_2(%arg0: i32, %arg1: i32) -> (i32, i32) {
    %c0_i32 = arith.constant 0 : i32
    %c0_i32_0 = arith.constant 0 : i32
    %c0_i32_1 = arith.constant 0 : i32
    return %c0_i32, %c0_i32_0 : i32, i32
  }
  func.func @transform_3(%arg0: i32, %arg1: i32) -> (i32, i32) {
    %c0_i32 = arith.constant 0 : i32
    %c0_i32_0 = arith.constant 0 : i32
    %c0_i32_1 = arith.constant 0 : i32
    return %c0_i32, %c0_i32_0 : i32, i32
  }
  func.func @transform_4(%arg0: i32, %arg1: i32) -> (i32, i32) {
    %c0_i32 = arith.constant 0 : i32
    %c0_i32_0 = arith.constant 0 : i32
    return %arg0, %c0_i32 : i32, i32
  }
}

module attributes {stable_mosaic.version = 11 : i64} {
  func.func @kernel(%arg0: i32, %arg1: i32, %arg2: memref<128x128xf32, #tpu.memory_space<vmem>>, %arg3: memref<128x128xbf16, #tpu.memory_space<vmem>>, %arg4: memref<128x128xf32, #tpu.memory_space<vmem>>, %arg5: memref<1x128xf32, #tpu.memory_space<vmem>>, %arg6: memref<128x128xf32, #tpu.memory_space<vmem>>, %arg7: memref<128x128xf32, #tpu.memory_space<vmem>>) attributes {dimension_semantics = [#tpu.dimension_semantics<parallel>, #tpu.dimension_semantics<arbitrary>], iteration_bounds = array<i64: 1, 1>, scalar_prefetch = 0 : i64, scratch_operands = 1 : i64, tpu.core_type = #tpu.core_type<tc>, window_params = [{transform_indices = @transform_0, window_bounds = array<i64: 128, 128>}, {pipeline_mode = #tpu.pipeline_mode<synchronous>, transform_indices = @transform_1, window_bounds = array<i64: 128, 128>}, {pipeline_mode = #tpu.pipeline_mode<synchronous>, transform_indices = @transform_2, window_bounds = array<i64: 128, 128>}, {pipeline_mode = #tpu.pipeline_mode<synchronous>, transform_indices = @transform_3, window_bounds = array<i64: 1, 128>}, {transform_indices = @transform_4, window_bounds = array<i64: 128, 128>}]} {
    %c0_i32 = arith.constant 0 : i32
    %0 = arith.cmpi eq, %arg1, %c0_i32 : i32
    %1 = arith.extui %0 : i1 to i32
    %c0_i32_0 = arith.constant 0 : i32
    %2 = arith.cmpi ne, %1, %c0_i32_0 : i32
    scf.if %2 {
      %cst_9 = arith.constant 0.000000e+00 : f32
      %16 = vector.broadcast %cst_9 : f32 to vector<128x128xf32>
      %c0_10 = arith.constant 0 : index
      %c0_11 = arith.constant 0 : index
      %17 = vector.load %arg7[%c0_10, %c0_11] : memref<128x128xf32, #tpu.memory_space<vmem>>, vector<128x128xf32>
      tpu.vector_store %arg7[%c0_10, %c0_11], %16 {strides = array<i32>} : memref<128x128xf32, #tpu.memory_space<vmem>>, vector<128x128xf32>,
    } else {
    }
    %c128_i32 = arith.constant 128 : i32
    %3 = arith.muli %arg1, %c128_i32 : i32
    %4 = tpu.assume_multiple %3, 128 : i32
    %5 = arith.index_cast %4 : i32 to index
    %c0 = arith.constant 0 : index
    %6 = vector.load %arg3[%5, %c0] : memref<128x128xbf16, #tpu.memory_space<vmem>>, vector<128x128xbf16>
    %c0_1 = arith.constant 0 : index
    %c0_2 = arith.constant 0 : index
    %7 = vector.load %arg2[%c0_1, %c0_2] : memref<128x128xf32, #tpu.memory_space<vmem>>, vector<128x128xf32>
    %8 = arith.truncf %7 : vector<128x128xf32> to vector<128x128xbf16>
    %c0_3 = arith.constant 0 : index
    %c0_4 = arith.constant 0 : index
    %9 = vector.load %arg7[%c0_3, %c0_4] : memref<128x128xf32, #tpu.memory_space<vmem>>, vector<128x128xf32>
    %cst = arith.constant dense<0.000000e+00> : vector<128x128xf32>
    %10 = tpu.matmul %8, %6, %cst {dimension_numbers = #tpu.dot_dimension_numbers<[1], [0], [0], [1], [0, 0, 1, 1], [], []>} : vector<128x128xbf16>, vector<128x128xbf16>, vector<128x128xf32> -> vector<128x128xf32>
    %11 = arith.addf %9, %10 : vector<128x128xf32>
    %c0_5 = arith.constant 0 : index
    %c0_6 = arith.constant 0 : index
    %12 = vector.load %arg7[%c0_5, %c0_6] : memref<128x128xf32, #tpu.memory_space<vmem>>, vector<128x128xf32>
    tpu.vector_store %arg7[%c0_5, %c0_6], %11 {strides = array<i32>} : memref<128x128xf32, #tpu.memory_space<vmem>>, vector<128x128xf32>,
    %c0_i32_7 = arith.constant 0 : i32
    %13 = arith.cmpi eq, %arg1, %c0_i32_7 : i32
    %14 = arith.extui %13 : i1 to i32
    %c0_i32_8 = arith.constant 0 : i32
    %15 = arith.cmpi ne, %14, %c0_i32_8 : i32
    scf.if %15 {
      %c0_9 = arith.constant 0 : index
      %c0_10 = arith.constant 0 : index
      %16 = vector.load %arg7[%c0_9, %c0_10] : memref<128x128xf32, #tpu.memory_space<vmem>>, vector<128x128xf32>
      %c0_11 = arith.constant 0 : index
      %c0_12 = arith.constant 0 : index
      %17 = vector.load %arg4[%c0_11, %c0_12] : memref<128x128xf32, #tpu.memory_space<vmem>>, vector<128x128xf32>
      %cst_13 = arith.constant dense<0.000000e+00> : vector<128x128xf32>
      %18 = tpu.matmul %16, %17, %cst_13 {dimension_numbers = #tpu.dot_dimension_numbers<[1], [0], [0], [1], [0, 0, 1, 1], [], []>} : vector<128x128xf32>, vector<128x128xf32>, vector<128x128xf32> -> vector<128x128xf32>
      %c0_14 = arith.constant 0 : index
      %c0_15 = arith.constant 0 : index
      %19 = vector.load %arg5[%c0_14, %c0_15] : memref<1x128xf32, #tpu.memory_space<vmem>>, vector<1x128xf32>
      %20 = vector.broadcast %19 : vector<1x128xf32> to vector<128x128xf32>
      %21 = arith.addf %18, %20 : vector<128x128xf32>
      %c0_16 = arith.constant 0 : index
      %c0_17 = arith.constant 0 : index
      %22 = vector.load %arg6[%c0_16, %c0_17] : memref<128x128xf32, #tpu.memory_space<vmem>>, vector<128x128xf32>
      tpu.vector_store %arg6[%c0_16, %c0_17], %21 {strides = array<i32>} : memref<128x128xf32, #tpu.memory_space<vmem>>, vector<128x128xf32>,
    } else {
    }
    return
  }
  func.func @transform_0(%arg0: i32, %arg1: i32) -> (i32, i32) {
    %c0_i32 = arith.constant 0 : i32
    return %arg0, %arg1 : i32, i32
  }
  func.func @transform_1(%arg0: i32, %arg1: i32) -> (i32, i32) {
    %c0_i32 = arith.constant 0 : i32
    %c0_i32_0 = arith.constant 0 : i32
    %c0_i32_1 = arith.constant 0 : i32
    return %c0_i32, %c0_i32_0 : i32, i32
  }
  func.func @transform_2(%arg0: i32, %arg1: i32) -> (i32, i32) {
    %c0_i32 = arith.constant 0 : i32
    %c0_i32_0 = arith.constant 0 : i32
    %c0_i32_1 = arith.constant 0 : i32
    return %c0_i32, %c0_i32_0 : i32, i32
  }
  func.func @transform_3(%arg0: i32, %arg1: i32) -> (i32, i32) {
    %c0_i32 = arith.constant 0 : i32
    %c0_i32_0 = arith.constant 0 : i32
    %c0_i32_1 = arith.constant 0 : i32
    return %c0_i32, %c0_i32_0 : i32, i32
  }
  func.func @transform_4(%arg0: i32, %arg1: i32) -> (i32, i32) {
    %c0_i32 = arith.constant 0 : i32
    %c0_i32_0 = arith.constant 0 : i32
    return %arg0, %c0_i32 : i32, i32
  }
}

</mosaic_0001>

<bundles_post_ra>
// kernel: tpu_custom_call.1
= control target key start
LH: loop header
LB: loop body
LE: loop exit
PB: predicated region body
PF: predicated region fallthrough
CT: control target
= control target key end

     0   :  { %9 = vsyncpa [#allocation4], 0  ;;  %s921_s0 = inlined_call_operand.hbm [shape: f32[128,128], index: 0, kind: input, shape index: {}]   ;;  %s922_s1 = inlined_call_operand.hbm [shape: bf16[128,128], index: 1, kind: input, shape index: {}]   ;;  %s923_s2 = inlined_call_operand.hbm [shape: f32[128,128], index: 2, kind: input, shape index: {}]   ;;  %s924_s3 = inlined_call_operand.vmem [shape: f32[1,128], index: 3, kind: input, shape index: {}]   ;;  %s925_s4 = inlined_call_operand.hbm [shape: f32[128,128], index: 4, kind: output, shape index: {}]  }
   0x1   :  { %10 = vsyncpa [#allocation7], 0 }
   0x2   :  { %11 = vsyncpa [#allocation5], 0  ;;  %s828_s15 = smov [#allocation6]   ;;  %s734_s19 = scalar_lea.hbm %s922_s1, 1024 }
   0x3   :  { %s29_s16 = sshll.u32 %s828_s15, 4  ;;  %p735_p0 = scmp.ne.s32.totalorder %s922_s1, %s734_s19  ;;  %s30_s16 = int_to_ptr.vmem [resolvable:$true] %s29_s16 }
   0x4   :  { %p738_p1 = scmp.lt.u32.totalorder %s734_s19, %s922_s1 }
   0x6   :  { %p740_p2 = pnand %p738_p1, %p735_p0 }
   0x8   :  { %743 = shalt.err (!%p740_p2)
}
   0x9   :  { %s744_s24 = scalar_lea.vmem %s30_s16, 1024  ;;  %p749_p4 = scmp.lt.s32.totalorder %s30_s16, %s30_s16 }
   0xa   :  { %p745_p3 = scmp.ne.s32.totalorder %s30_s16, %s744_s24  ;;  %p750_p5 = scmp.lt.s32.totalorder %s744_s24, %s744_s24 }
   0xc   :  { %p751_p6 = por %p750_p5, %p749_p4 }
   0xe   :  { %p752_p7 = pnand %p751_p6, %p745_p3 }
  0x10   :  { %755 = shalt.err (!%p752_p7)
}
  0x11   :  { %s829_s25 = smov 64   ;;  %s830_s26 = smov 4  }
  0x12   :  { %35 = dma.hbm_to_vmem [thread:$0]  %s922_s1, 1024, %s30_s16, [#allocation7], %s829_s25, %s829_s25, %s830_s26  }
  0x13   :  { %s831_s29 = smov [#allocation3]   ;;  %s756_s7 = scalar_lea.hbm %s921_s0, 2048 }
  0x14   :  { %s17_s30 = sshll.u32 %s831_s29, 4  ;;  %p757_p8 = scmp.ne.s32.totalorder %s921_s0, %s756_s7  ;;  %s18_s30 = int_to_ptr.vmem [resolvable:$true] %s17_s30 }
  0x15   :  { %p760_p9 = scmp.lt.u32.totalorder %s756_s7, %s921_s0 }
  0x17   :  { %p762_p10 = pnand %p760_p9, %p757_p8 }
  0x19   :  { %765 = shalt.err (!%p762_p10)
}
  0x1a   :  { %s766_s12 = scalar_lea.vmem %s18_s30, 2048  ;;  %p771_p12 = scmp.lt.s32.totalorder %s18_s30, %s18_s30 }
  0x1b   :  { %p767_p11 = scmp.ne.s32.totalorder %s18_s30, %s766_s12  ;;  %p772_p13 = scmp.lt.s32.totalorder %s766_s12, %s766_s12 }
  0x1d   :  { %p773_p0 = por %p772_p13, %p771_p12 }
  0x1f   :  { %p774_p1 = pnand %p773_p0, %p767_p11 }
  0x21   :  { %777 = shalt.err (!%p774_p1)
}
  0x22   :  { %s832_s1 = smov 128   ;;  %s833_s13 = smov 8  }
  0x23   :  { %23 = dma.hbm_to_vmem [thread:$0]  %s921_s0, 2048, %s18_s30, [#allocation4], %s832_s1, %s832_s1, %s833_s13  }
  0x24   :  { %s834_s16 = smov [#allocation8]   ;;  %s778_s20 = scalar_lea.hbm %s923_s2, 2048 }
  0x25   :  { %s41_s17 = sshll.u32 %s834_s16, 4  ;;  %p779_p2 = scmp.ne.s32.totalorder %s923_s2, %s778_s20  ;;  %s42_s17 = int_to_ptr.vmem [resolvable:$true] %s41_s17 }
  0x26   :  { %p782_p3 = scmp.lt.u32.totalorder %s778_s20, %s923_s2 }
  0x28   :  { %p784_p4 = pnand %p782_p3, %p779_p2 }
  0x2a   :  { %787 = shalt.err (!%p784_p4)
}
  0x2b   :  { %s788_s25 = scalar_lea.vmem %s42_s17, 2048  ;;  %p793_p6 = scmp.lt.s32.totalorder %s42_s17, %s42_s17 }
  0x2c   :  { %p789_p5 = scmp.ne.s32.totalorder %s42_s17, %s788_s25  ;;  %p794_p7 = scmp.lt.s32.totalorder %s788_s25, %s788_s25 }
  0x2e   :  { %p795_p8 = por %p794_p7, %p793_p6 }
  0x30   :  { %p796_p9 = pnand %p795_p8, %p789_p5 }
  0x32   :  { %799 = shalt.err (!%p796_p9)
}
  0x33   :  { %47 = dma.hbm_to_vmem [thread:$0]  %s923_s2, 2048, %s42_s17, [#allocation7], %s832_s1, %s832_s1, %s833_s13  }
  0x34   :  { %822 = dma.done.wait [#allocation4], 2048  }
  0x35   :  { %823 = vsyncadd [#allocation4], 4294965248 }
  0x36   :  { %824 = dma.done.wait [#allocation7], 3072  }
  0x37   :  { %825 = vsyncadd [#allocation7], 4294964224  ;;  %v726_v0 = vld [vmem:[#allocation6] sm:$0xff]   ;;  %v727_v1 = vld [vmem:[#allocation6 + $0x8] sm:$0xff]  }
  0x38   :  { %598 = vmatprep.subr.bf16.mxu0 %v726_v0  ;;  %v728_v2 = vld [vmem:[#allocation6 + $0x10] sm:$0xff]   ;;  %v729_v3 = vld [vmem:[#allocation6 + $0x18] sm:$0xff]   ;;  %v101_v4 = vld [vmem:[#allocation3] sm:$0xff] }
  0x39   :  { %599 = vmatpush3.bf16.msra.mxu0 %v726_v0  ;;  %v102_v5 = vld [vmem:[#allocation3 + $0x8] sm:$0xff]  ;;  %v730_v7 = vld [vmem:[#allocation6 + $0x20] sm:$0xff]   ;;  %v339_v11 = vld [vmem:[#allocation8 + $0x10] sm:$0xff] }
  0x3a   :  { %600 = vmatprep.subr.bf16.mxu0 %v727_v1  ;;  %v117_v6 = vpack.c.bf16 %v102_v5, %v101_v4  ;;  %v337_v8 = vld [vmem:[#allocation8] sm:$0xff]  ;;  %v338_v9 = vld [vmem:[#allocation8 + $0x8] sm:$0xff]  ;;  %v340_v12 = vld [vmem:[#allocation8 + $0x18] sm:$0xff] }
  0x3b   :  { %v686_v10 = vpack.c.bf16 %v338_v9, %v337_v8  ;;  %v690_v13 = vpack.c.bf16 %v340_v12, %v339_v11  ;;  %v341_v14 = vld [vmem:[#allocation8 + $0x20] sm:$0xff]  ;;  %v342_v15 = vld [vmem:[#allocation8 + $0x28] sm:$0xff]  ;;  %v343_v18 = vld [vmem:[#allocation8 + $0x30] sm:$0xff] }
  0x3c   :  { %614 = vmatprep.mubr.bf16.mxu0 %v117_v6  ;;  %v731_v16 = vld [vmem:[#allocation6 + $0x28] sm:$0xff]   ;;  %v694_v17 = vpack.c.bf16 %v342_v15, %v341_v14  ;;  %v344_v19 = vld [vmem:[#allocation8 + $0x38] sm:$0xff]  ;;  %v732_v20 = vld [vmem:[#allocation6 + $0x30] sm:$0xff]  }
  0x3d   :  { %601 = vmatpush3.bf16.msra.mxu0 %v727_v1  ;;  %687 = vmatprep.subr.bf16.mxu1 %v686_v10  ;;  %v698_v21 = vpack.c.bf16 %v344_v19, %v343_v18  ;;  %v345_v22 = vld [vmem:[#allocation8 + $0x40] sm:$0xff]  ;;  %v346_v23 = vld [vmem:[#allocation8 + $0x48] sm:$0xff]  ;;  %v733_v24 = vld [vmem:[#allocation6 + $0x38] sm:$0xff]  }
  0x3e   :  { %602 = vmatprep.subr.bf16.mxu0 %v728_v2  ;;  %689 = vmatpush3.bf16.msra.mxu1 %v686_v10  ;;  %v103_v25 = vld [vmem:[#allocation3 + $0x10] sm:$0xff]  ;;  %v702_v26 = vpack.c.bf16 %v346_v23, %v345_v22  ;;  %v104_v27 = vld [vmem:[#allocation3 + $0x18] sm:$0xff]  ;;  %v105_v30 = vld [vmem:[#allocation3 + $0x20] sm:$0xff] }
  0x3f   :  { %691 = vmatprep.subr.bf16.mxu1 %v690_v13  ;;  %v347_v28 = vld [vmem:[#allocation8 + $0x50] sm:$0xff]  ;;  %v348_v29 = vld [vmem:[#allocation8 + $0x58] sm:$0xff]  ;;  %v106_v31 = vld [vmem:[#allocation3 + $0x28] sm:$0xff]  ;;  %v118_v32 = vpack.c.bf16 %v104_v27, %v103_v25 }
  0x40   :  { %v706_v33 = vpack.c.bf16 %v348_v29, %v347_v28  ;;  %v119_v34 = vpack.c.bf16 %v106_v31, %v105_v30  ;;  %v349_v35 = vld [vmem:[#allocation8 + $0x60] sm:$0xff]  ;;  %v350_v36 = vld [vmem:[#allocation8 + $0x68] sm:$0xff]  ;;  %v107_v38 = vld [vmem:[#allocation3 + $0x30] sm:$0xff] }
  0x41   :  { %603 = vmatpush3.bf16.msra.mxu0 %v728_v2  ;;  %v710_v37 = vpack.c.bf16 %v350_v36, %v349_v35  ;;  %v108_v39 = vld [vmem:[#allocation3 + $0x38] sm:$0xff]  ;;  %v109_v40 = vld [vmem:[#allocation3 + $0x40] sm:$0xff]  ;;  %v110_v41 = vld [vmem:[#allocation3 + $0x48] sm:$0xff] }
  0x42   :  { %604 = vmatprep.subr.bf16.mxu0 %v729_v3  ;;  %693 = vmatpush3.bf16.msra.mxu1 %v690_v13  ;;  %v120_v42 = vpack.c.bf16 %v108_v39, %v107_v38  ;;  %v121_v43 = vpack.c.bf16 %v110_v41, %v109_v40  ;;  %v111_v44 = vld [vmem:[#allocation3 + $0x50] sm:$0xff]  ;;  %v112_v45 = vld [vmem:[#allocation3 + $0x58] sm:$0xff]  ;;  %v113_v46 = vld [vmem:[#allocation3 + $0x60] sm:$0xff] }
  0x43   :  { %695 = vmatprep.subr.bf16.mxu1 %v694_v17  ;;  %v114_v47 = vld [vmem:[#allocation3 + $0x68] sm:$0xff]  ;;  %v122_v48 = vpack.c.bf16 %v112_v45, %v111_v44  ;;  %v115_v50 = vld [vmem:[#allocation3 + $0x70] sm:$0xff]  ;;  %v116_v51 = vld [vmem:[#allocation3 + $0x78] sm:$0xff] }
  0x44   :  { %v123_v49 = vpack.c.bf16 %v114_v47, %v113_v46  ;;  %v124_v52 = vpack.c.bf16 %v116_v51, %v115_v50  ;;  %v351_v53 = vld [vmem:[#allocation8 + $0x70] sm:$0xff]  ;;  %v352_v54 = vld [vmem:[#allocation8 + $0x78] sm:$0xff]  ;;  %v549_v8 = vld [vmem:[%s924_s3] ss:$0 sm:$0xff]  ;;  %s835_s3 = smov [#allocation9]  }
  0x45   :  { %605 = vmatpush3.bf16.msra.mxu0 %v729_v3  ;;  %v714_v55 = vpack.c.bf16 %v352_v54, %v351_v53  ;;  %s526_s28 = sshll.u32 %s835_s3, 4  ;;  %s527_s28 = int_to_ptr.vmem [resolvable:$true] %s526_s28 }
  0x46   :  { %606 = vmatprep.subr.bf16.mxu0 %v730_v7  ;;  %697 = vmatpush3.bf16.msra.mxu1 %v694_v17  ;;  %s800_s29 = scalar_lea.vmem %s527_s28, 2048  ;;  %p805_p11 = scmp.lt.s32.totalorder %s527_s28, %s527_s28 }
  0x47   :  { %699 = vmatprep.subr.bf16.mxu1 %v698_v21  ;;  %p801_p10 = scmp.ne.s32.totalorder %s527_s28, %s800_s29  ;;  %p806_p12 = scmp.lt.s32.totalorder %s800_s29, %s800_s29 }
  0x49   :  { %607 = vmatpush3.bf16.msra.mxu0 %v730_v7  ;;  %p807_p13 = por %p806_p12, %p805_p11 }
  0x4a   :  { %608 = vmatprep.subr.bf16.mxu0 %v731_v16  ;;  %701 = vmatpush3.bf16.msra.mxu1 %v698_v21 }
  0x4b   :  { %703 = vmatprep.subr.bf16.mxu1 %v702_v26  ;;  %p808_p0 = pnand %p807_p13, %p801_p10 }
  0x4d   :  { %609 = vmatpush3.bf16.msra.mxu0 %v731_v16 }
  0x4e   :  { %610 = vmatprep.subr.bf16.mxu0 %v732_v20  ;;  %705 = vmatpush3.bf16.msra.mxu1 %v702_v26 }
  0x4f   :  { %707 = vmatprep.subr.bf16.mxu1 %v706_v33 }
  0x51   :  { %611 = vmatpush3.bf16.msra.mxu0 %v732_v20 }
  0x52   :  { %612 = vmatprep.subr.bf16.mxu0 %v733_v24  ;;  %709 = vmatpush3.bf16.msra.mxu1 %v706_v33 }
  0x53   :  { %711 = vmatprep.subr.bf16.mxu1 %v710_v37 }
  0x55   :  { %613 = vmatpush3.bf16.msra.mxu0 %v733_v24 }
  0x56   :  { %713 = vmatpush3.bf16.msra.mxu1 %v710_v37 }
  0x57   :  { %715 = vmatprep.subr.bf16.mxu1 %v714_v55 }
  0x58   :  { %615 = vmatmul.mubr.bf16.vlgmr.msra.gmra.mrb[0].mxu0 %v118_v32 }
  0x59   :  { %618 = vmatprep.mubr.bf16.mxu0 %v119_v34 }
  0x5a   :  { %717 = vmatpush3.bf16.msra.mxu1 %v714_v55 }
  0x60   :  { %619 = vmatmul.mubr.bf16.gmra.mrb[4].mxu0 %v120_v42 }
  0x61   :  { %622 = vmatprep.mubr.bf16.mxu0 %v121_v43 }
  0x68   :  { %623 = vmatmul.mubr.bf16.gmra.mrb[8].mxu0 %v122_v48 }
  0x69   :  { %626 = vmatprep.mubr.bf16.mxu0 %v123_v49 }
  0x70   :  { %627 = vmatmul.mubr.bf16.gmra.mrb[12].mxu0 %v124_v52 }
 0x12b   :  { %v616_v56 = vpop.f32.mrb[0].mxu0 }
 0x12c   :  { %v223_v57 = vpop.f32.mrb[1].mxu0 }
 0x12d   :  { %v617_v58 = vpop.f32.mrb[2].mxu0  ;;  %662 = vmatprep.mubr.f32.mxu1 %v223_v57 }
 0x12e   :  { %v226_v59 = vpop.f32.mrb[3].mxu0 }
 0x12f   :  { %663 = vmatmul.mubr.f32.vlgmr.msra.gmra.mrb[0].mxu1 %v226_v59 }
 0x130   :  { %665 = vmatprep.mubr.f32.mxu1 %v616_v56 }
 0x133   :  { %v620_v60 = vpop.f32.mrb[4].mxu0  ;;  %666 = vmatmul.mubr.f32.gmra.mrb[2].mxu1 %v617_v58 }
 0x134   :  { %v239_v61 = vpop.f32.mrb[5].mxu0 }
 0x135   :  { %v621_v62 = vpop.f32.mrb[6].mxu0  ;;  %668 = vmatprep.mubr.f32.mxu1 %v239_v61 }
 0x136   :  { %v242_v63 = vpop.f32.mrb[7].mxu0 }
 0x137   :  { %669 = vmatmul.mubr.f32.gmra.mrb[4].mxu1 %v242_v63 }
 0x138   :  { %671 = vmatprep.mubr.f32.mxu1 %v620_v60 }
 0x13b   :  { %v624_v0 = vpop.f32.mrb[8].mxu0  ;;  %672 = vmatmul.mubr.f32.gmra.mrb[6].mxu1 %v621_v62 }
 0x13c   :  { %v255_v1 = vpop.f32.mrb[9].mxu0 }
 0x13d   :  { %v625_v2 = vpop.f32.mrb[10].mxu0  ;;  %674 = vmatprep.mubr.f32.mxu1 %v255_v1 }
 0x13e   :  { %v258_v3 = vpop.f32.mrb[11].mxu0 }
 0x13f   :  { %675 = vmatmul.mubr.f32.gmra.mrb[8].mxu1 %v258_v3 }
 0x140   :  { %677 = vmatprep.mubr.f32.mxu1 %v624_v0 }
 0x143   :  { %v628_v4 = vpop.f32.mrb[12].mxu0  ;;  %678 = vmatmul.mubr.f32.gmra.mrb[10].mxu1 %v625_v2 }
 0x144   :  { %v271_v5 = vpop.f32.mrb[13].mxu0 }
 0x145   :  { %v629_v6 = vpop.f32.mrb[14].mxu0  ;;  %680 = vmatprep.mubr.f32.mxu1 %v271_v5 }
 0x146   :  { %v274_v7 = vpop.f32.mrb[15].mxu0 }
 0x147   :  { %681 = vmatmul.mubr.f32.gmra.mrb[12].mxu1 %v274_v7 }
 0x148   :  { %683 = vmatprep.mubr.f32.mxu1 %v628_v4 }
 0x14b   :  { %684 = vmatmul.mubr.f32.gmra.mrb[14].mxu1 %v629_v6 }
 0x202   :  { %v664_v9 = vpop.f32.mrb[0].mxu1 }
 0x203   :  { %v432_v10 = vadd.f32 %v664_v9, %v549_v8  ;;  %v426_v11 = vpop.f32.mrb[1].mxu1 }
 0x204   :  { %v427_v12 = vadd.f32 %v549_v8, %v426_v11 }
 0x205   :  { %506 = vst [vmem:[#allocation9 + $0x8] sm:$0xff] %v432_v10 }
 0x206   :  { %505 = vst [vmem:[#allocation9] sm:$0xff] %v427_v12  ;;  %v667_v13 = vpop.f32.mrb[2].mxu1 }
 0x207   :  { %v442_v14 = vadd.f32 %v667_v13, %v549_v8  ;;  %v436_v15 = vpop.f32.mrb[3].mxu1 }
 0x208   :  { %v437_v16 = vadd.f32 %v549_v8, %v436_v15 }
 0x209   :  { %508 = vst [vmem:[#allocation9 + $0x18] sm:$0xff] %v442_v14 }
 0x20a   :  { %507 = vst [vmem:[#allocation9 + $0x10] sm:$0xff] %v437_v16  ;;  %v670_v17 = vpop.f32.mrb[4].mxu1 }
 0x20b   :  { %v452_v18 = vadd.f32 %v670_v17, %v549_v8  ;;  %v446_v19 = vpop.f32.mrb[5].mxu1 }
 0x20c   :  { %v447_v20 = vadd.f32 %v549_v8, %v446_v19 }
 0x20d   :  { %510 = vst [vmem:[#allocation9 + $0x28] sm:$0xff] %v452_v18 }
 0x20e   :  { %509 = vst [vmem:[#allocation9 + $0x20] sm:$0xff] %v447_v20  ;;  %v673_v21 = vpop.f32.mrb[6].mxu1 }
 0x20f   :  { %v462_v22 = vadd.f32 %v673_v21, %v549_v8  ;;  %v456_v23 = vpop.f32.mrb[7].mxu1 }
 0x210   :  { %v457_v24 = vadd.f32 %v549_v8, %v456_v23 }
 0x211   :  { %512 = vst [vmem:[#allocation9 + $0x38] sm:$0xff] %v462_v22 }
 0x212   :  { %511 = vst [vmem:[#allocation9 + $0x30] sm:$0xff] %v457_v24  ;;  %v676_v25 = vpop.f32.mrb[8].mxu1 }
 0x213   :  { %v472_v26 = vadd.f32 %v676_v25, %v549_v8  ;;  %v466_v27 = vpop.f32.mrb[9].mxu1 }
 0x214   :  { %v467_v28 = vadd.f32 %v549_v8, %v466_v27 }
 0x215   :  { %514 = vst [vmem:[#allocation9 + $0x48] sm:$0xff] %v472_v26 }
 0x216   :  { %513 = vst [vmem:[#allocation9 + $0x40] sm:$0xff] %v467_v28  ;;  %v679_v29 = vpop.f32.mrb[10].mxu1 }
 0x217   :  { %v482_v30 = vadd.f32 %v679_v29, %v549_v8  ;;  %v476_v31 = vpop.f32.mrb[11].mxu1 }
 0x218   :  { %v477_v32 = vadd.f32 %v549_v8, %v476_v31 }
 0x219   :  { %516 = vst [vmem:[#allocation9 + $0x58] sm:$0xff] %v482_v30 }
 0x21a   :  { %515 = vst [vmem:[#allocation9 + $0x50] sm:$0xff] %v477_v32  ;;  %v682_v33 = vpop.f32.mrb[12].mxu1 }
 0x21b   :  { %v492_v34 = vadd.f32 %v682_v33, %v549_v8  ;;  %v486_v35 = vpop.f32.mrb[13].mxu1 }
 0x21c   :  { %v487_v36 = vadd.f32 %v549_v8, %v486_v35 }
 0x21d   :  { %518 = vst [vmem:[#allocation9 + $0x68] sm:$0xff] %v492_v34 }
 0x21e   :  { %517 = vst [vmem:[#allocation9 + $0x60] sm:$0xff] %v487_v36  ;;  %v685_v37 = vpop.f32.mrb[14].mxu1 }
 0x21f   :  { %v502_v38 = vadd.f32 %v685_v37, %v549_v8  ;;  %v496_v39 = vpop.f32.mrb[15].mxu1 }
 0x220   :  { %v497_v40 = vadd.f32 %v549_v8, %v496_v39 }
 0x221   :  { %520 = vst [vmem:[#allocation9 + $0x78] sm:$0xff] %v502_v38 }
 0x222   :  { %519 = vst [vmem:[#allocation9 + $0x70] sm:$0xff] %v497_v40 }
 0x223   :  { %811 = shalt.err (!%p808_p0)
}
 0x224   :  { %s812_s6 = scalar_lea.hbm %s925_s4, 2048 }
 0x225   :  { %p813_p1 = scmp.ne.s32.totalorder %s925_s4, %s812_s6  ;;  %p816_p2 = scmp.lt.u32.totalorder %s812_s6, %s925_s4 }
 0x227   :  { %p818_p3 = pnand %p816_p2, %p813_p1 }
 0x229   :  { %821 = shalt.err (!%p818_p3)
}
 0x22a   :  { %532 = dma.vmem_to_hbm [thread:$0]  %s527_s28, 2048, %s925_s4, [#allocation5], %s832_s1, %s832_s1, %s833_s13  }
 0x22b   :  { %826 = dma.done.wait [#allocation5], 2048  }
 0x22c   :  { %827 = vsyncadd [#allocation5], 4294965248 }
 0x22d   :  { %536 = vsyncpa [#allocation4], 1 }
 0x22e   :  { %537 = vsyncpa [#allocation7], 1 }
 0x22f   :  { %538 = vsyncpa [#allocation5], 1 }

// kernel: tpu_custom_call.1
= control target key start
LH: loop header
LB: loop body
LE: loop exit
PB: predicated region body
PF: predicated region fallthrough
CT: control target
= control target key end

     0   :  { %9 = vsyncpa [#allocation4], 0  ;;  %s921_s0 = inlined_call_operand.hbm [shape: f32[128,128], index: 0, kind: input, shape index: {}]   ;;  %s922_s1 = inlined_call_operand.hbm [shape: bf16[128,128], index: 1, kind: input, shape index: {}]   ;;  %s923_s2 = inlined_call_operand.hbm [shape: f32[128,128], index: 2, kind: input, shape index: {}]   ;;  %s924_s3 = inlined_call_operand.vmem [shape: f32[1,128], index: 3, kind: input, shape index: {}]   ;;  %s925_s4 = inlined_call_operand.hbm [shape: f32[128,128], index: 4, kind: output, shape index: {}]  }
   0x1   :  { %10 = vsyncpa [#allocation7], 0 }
   0x2   :  { %11 = vsyncpa [#allocation5], 0  ;;  %s828_s15 = smov [#allocation6]   ;;  %s734_s19 = scalar_lea.hbm %s922_s1, 1024 }
   0x3   :  { %s29_s16 = sshll.u32 %s828_s15, 4  ;;  %p735_p0 = scmp.ne.s32.totalorder %s922_s1, %s734_s19  ;;  %s30_s16 = int_to_ptr.vmem [resolvable:$true] %s29_s16 }
   0x4   :  { %p738_p1 = scmp.lt.u32.totalorder %s734_s19, %s922_s1 }
   0x6   :  { %p740_p2 = pnand %p738_p1, %p735_p0 }
   0x8   :  { %743 = shalt.err (!%p740_p2)
}
   0x9   :  { %s744_s24 = scalar_lea.vmem %s30_s16, 1024  ;;  %p749_p4 = scmp.lt.s32.totalorder %s30_s16, %s30_s16 }
   0xa   :  { %p745_p3 = scmp.ne.s32.totalorder %s30_s16, %s744_s24  ;;  %p750_p5 = scmp.lt.s32.totalorder %s744_s24, %s744_s24 }
   0xc   :  { %p751_p6 = por %p750_p5, %p749_p4 }
   0xe   :  { %p752_p7 = pnand %p751_p6, %p745_p3 }
  0x10   :  { %755 = shalt.err (!%p752_p7)
}
  0x11   :  { %s829_s25 = smov 64   ;;  %s830_s26 = smov 4  }
  0x12   :  { %35 = dma.hbm_to_vmem [thread:$0]  %s922_s1, 1024, %s30_s16, [#allocation7], %s829_s25, %s829_s25, %s830_s26  }
  0x13   :  { %s831_s29 = smov [#allocation3]   ;;  %s756_s7 = scalar_lea.hbm %s921_s0, 2048 }
  0x14   :  { %s17_s30 = sshll.u32 %s831_s29, 4  ;;  %p757_p8 = scmp.ne.s32.totalorder %s921_s0, %s756_s7  ;;  %s18_s30 = int_to_ptr.vmem [resolvable:$true] %s17_s30 }
  0x15   :  { %p760_p9 = scmp.lt.u32.totalorder %s756_s7, %s921_s0 }
  0x17   :  { %p762_p10 = pnand %p760_p9, %p757_p8 }
  0x19   :  { %765 = shalt.err (!%p762_p10)
}
  0x1a   :  { %s766_s12 = scalar_lea.vmem %s18_s30, 2048  ;;  %p771_p12 = scmp.lt.s32.totalorder %s18_s30, %s18_s30 }
  0x1b   :  { %p767_p11 = scmp.ne.s32.totalorder %s18_s30, %s766_s12  ;;  %p772_p13 = scmp.lt.s32.totalorder %s766_s12, %s766_s12 }
  0x1d   :  { %p773_p0 = por %p772_p13, %p771_p12 }
  0x1f   :  { %p774_p1 = pnand %p773_p0, %p767_p11 }
  0x21   :  { %777 = shalt.err (!%p774_p1)
}
  0x22   :  { %s832_s1 = smov 128   ;;  %s833_s13 = smov 8  }
  0x23   :  { %23 = dma.hbm_to_vmem [thread:$0]  %s921_s0, 2048, %s18_s30, [#allocation4], %s832_s1, %s832_s1, %s833_s13  }
  0x24   :  { %s834_s16 = smov [#allocation8]   ;;  %s778_s20 = scalar_lea.hbm %s923_s2, 2048 }
  0x25   :  { %s41_s17 = sshll.u32 %s834_s16, 4  ;;  %p779_p2 = scmp.ne.s32.totalorder %s923_s2, %s778_s20  ;;  %s42_s17 = int_to_ptr.vmem [resolvable:$true] %s41_s17 }
  0x26   :  { %p782_p3 = scmp.lt.u32.totalorder %s778_s20, %s923_s2 }
  0x28   :  { %p784_p4 = pnand %p782_p3, %p779_p2 }
  0x2a   :  { %787 = shalt.err (!%p784_p4)
}
  0x2b   :  { %s788_s25 = scalar_lea.vmem %s42_s17, 2048  ;;  %p793_p6 = scmp.lt.s32.totalorder %s42_s17, %s42_s17 }
  0x2c   :  { %p789_p5 = scmp.ne.s32.totalorder %s42_s17, %s788_s25  ;;  %p794_p7 = scmp.lt.s32.totalorder %s788_s25, %s788_s25 }
  0x2e   :  { %p795_p8 = por %p794_p7, %p793_p6 }
  0x30   :  { %p796_p9 = pnand %p795_p8, %p789_p5 }
  0x32   :  { %799 = shalt.err (!%p796_p9)
}
  0x33   :  { %47 = dma.hbm_to_vmem [thread:$0]  %s923_s2, 2048, %s42_s17, [#allocation7], %s832_s1, %s832_s1, %s833_s13  }
  0x34   :  { %822 = dma.done.wait [#allocation4], 2048  }
  0x35   :  { %823 = vsyncadd [#allocation4], 4294965248 }
  0x36   :  { %824 = dma.done.wait [#allocation7], 3072  }
  0x37   :  { %825 = vsyncadd [#allocation7], 4294964224  ;;  %v726_v0 = vld [vmem:[#allocation6] sm:$0xff]   ;;  %v727_v1 = vld [vmem:[#allocation6 + $0x8] sm:$0xff]  }
  0x38   :  { %598 = vmatprep.subr.bf16.mxu0 %v726_v0  ;;  %v728_v2 = vld [vmem:[#allocation6 + $0x10] sm:$0xff]   ;;  %v729_v3 = vld [vmem:[#allocation6 + $0x18] sm:$0xff]   ;;  %v101_v4 = vld [vmem:[#allocation3] sm:$0xff] }
  0x39   :  { %599 = vmatpush3.bf16.msra.mxu0 %v726_v0  ;;  %v102_v5 = vld [vmem:[#allocation3 + $0x8] sm:$0xff]  ;;  %v730_v7 = vld [vmem:[#allocation6 + $0x20] sm:$0xff]   ;;  %v339_v11 = vld [vmem:[#allocation8 + $0x10] sm:$0xff] }
  0x3a   :  { %600 = vmatprep.subr.bf16.mxu0 %v727_v1  ;;  %v117_v6 = vpack.c.bf16 %v102_v5, %v101_v4  ;;  %v337_v8 = vld [vmem:[#allocation8] sm:$0xff]  ;;  %v338_v9 = vld [vmem:[#allocation8 + $0x8] sm:$0xff]  ;;  %v340_v12 = vld [vmem:[#allocation8 + $0x18] sm:$0xff] }
  0x3b   :  { %v686_v10 = vpack.c.bf16 %v338_v9, %v337_v8  ;;  %v690_v13 = vpack.c.bf16 %v340_v12, %v339_v11  ;;  %v341_v14 = vld [vmem:[#allocation8 + $0x20] sm:$0xff]  ;;  %v342_v15 = vld [vmem:[#allocation8 + $0x28] sm:$0xff]  ;;  %v343_v18 = vld [vmem:[#allocation8 + $0x30] sm:$0xff] }
  0x3c   :  { %614 = vmatprep.mubr.bf16.mxu0 %v117_v6  ;;  %v731_v16 = vld [vmem:[#allocation6 + $0x28] sm:$0xff]   ;;  %v694_v17 = vpack.c.bf16 %v342_v15, %v341_v14  ;;  %v344_v19 = vld [vmem:[#allocation8 + $0x38] sm:$0xff]  ;;  %v732_v20 = vld [vmem:[#allocation6 + $0x30] sm:$0xff]  }
  0x3d   :  { %601 = vmatpush3.bf16.msra.mxu0 %v727_v1  ;;  %687 = vmatprep.subr.bf16.mxu1 %v686_v10  ;;  %v698_v21 = vpack.c.bf16 %v344_v19, %v343_v18  ;;  %v345_v22 = vld [vmem:[#allocation8 + $0x40] sm:$0xff]  ;;  %v346_v23 = vld [vmem:[#allocation8 + $0x48] sm:$0xff]  ;;  %v733_v24 = vld [vmem:[#allocation6 + $0x38] sm:$0xff]  }
  0x3e   :  { %602 = vmatprep.subr.bf16.mxu0 %v728_v2  ;;  %689 = vmatpush3.bf16.msra.mxu1 %v686_v10  ;;  %v103_v25 = vld [vmem:[#allocation3 + $0x10] sm:$0xff]  ;;  %v702_v26 = vpack.c.bf16 %v346_v23, %v345_v22  ;;  %v104_v27 = vld [vmem:[#allocation3 + $0x18] sm:$0xff]  ;;  %v105_v30 = vld [vmem:[#allocation3 + $0x20] sm:$0xff] }
  0x3f   :  { %691 = vmatprep.subr.bf16.mxu1 %v690_v13  ;;  %v347_v28 = vld [vmem:[#allocation8 + $0x50] sm:$0xff]  ;;  %v348_v29 = vld [vmem:[#allocation8 + $0x58] sm:$0xff]  ;;  %v106_v31 = vld [vmem:[#allocation3 + $0x28] sm:$0xff]  ;;  %v118_v32 = vpack.c.bf16 %v104_v27, %v103_v25 }
  0x40   :  { %v706_v33 = vpack.c.bf16 %v348_v29, %v347_v28  ;;  %v119_v34 = vpack.c.bf16 %v106_v31, %v105_v30  ;;  %v349_v35 = vld [vmem:[#allocation8 + $0x60] sm:$0xff]  ;;  %v350_v36 = vld [vmem:[#allocation8 + $0x68] sm:$0xff]  ;;  %v107_v38 = vld [vmem:[#allocation3 + $0x30] sm:$0xff] }
  0x41   :  { %603 = vmatpush3.bf16.msra.mxu0 %v728_v2  ;;  %v710_v37 = vpack.c.bf16 %v350_v36, %v349_v35  ;;  %v108_v39 = vld [vmem:[#allocation3 + $0x38] sm:$0xff]  ;;  %v109_v40 = vld [vmem:[#allocation3 + $0x40] sm:$0xff]  ;;  %v110_v41 = vld [vmem:[#allocation3 + $0x48] sm:$0xff] }
  0x42   :  { %604 = vmatprep.subr.bf16.mxu0 %v729_v3  ;;  %693 = vmatpush3.bf16.msra.mxu1 %v690_v13  ;;  %v120_v42 = vpack.c.bf16 %v108_v39, %v107_v38  ;;  %v121_v43 = vpack.c.bf16 %v110_v41, %v109_v40  ;;  %v111_v44 = vld [vmem:[#allocation3 + $0x50] sm:$0xff]  ;;  %v112_v45 = vld [vmem:[#allocation3 + $0x58] sm:$0xff]  ;;  %v113_v46 = vld [vmem:[#allocation3 + $0x60] sm:$0xff] }
  0x43   :  { %695 = vmatprep.subr.bf16.mxu1 %v694_v17  ;;  %v114_v47 = vld [vmem:[#allocation3 + $0x68] sm:$0xff]  ;;  %v122_v48 = vpack.c.bf16 %v112_v45, %v111_v44  ;;  %v115_v50 = vld [vmem:[#allocation3 + $0x70] sm:$0xff]  ;;  %v116_v51 = vld [vmem:[#allocation3 + $0x78] sm:$0xff] }
  0x44   :  { %v123_v49 = vpack.c.bf16 %v114_v47, %v113_v46  ;;  %v124_v52 = vpack.c.bf16 %v116_v51, %v115_v50  ;;  %v351_v53 = vld [vmem:[#allocation8 + $0x70] sm:$0xff]  ;;  %v352_v54 = vld [vmem:[#allocation8 + $0x78] sm:$0xff]  ;;  %v549_v8 = vld [vmem:[%s924_s3] ss:$0 sm:$0xff]  ;;  %s835_s3 = smov [#allocation9]  }
  0x45   :  { %605 = vmatpush3.bf16.msra.mxu0 %v729_v3  ;;  %v714_v55 = vpack.c.bf16 %v352_v54, %v351_v53  ;;  %s526_s28 = sshll.u32 %s835_s3, 4  ;;  %s527_s28 = int_to_ptr.vmem [resolvable:$true] %s526_s28 }
  0x46   :  { %606 = vmatprep.subr.bf16.mxu0 %v730_v7  ;;  %697 = vmatpush3.bf16.msra.mxu1 %v694_v17  ;;  %s800_s29 = scalar_lea.vmem %s527_s28, 2048  ;;  %p805_p11 = scmp.lt.s32.totalorder %s527_s28, %s527_s28 }
  0x47   :  { %699 = vmatprep.subr.bf16.mxu1 %v698_v21  ;;  %p801_p10 = scmp.ne.s32.totalorder %s527_s28, %s800_s29  ;;  %p806_p12 = scmp.lt.s32.totalorder %s800_s29, %s800_s29 }
  0x49   :  { %607 = vmatpush3.bf16.msra.mxu0 %v730_v7  ;;  %p807_p13 = por %p806_p12, %p805_p11 }
  0x4a   :  { %608 = vmatprep.subr.bf16.mxu0 %v731_v16  ;;  %701 = vmatpush3.bf16.msra.mxu1 %v698_v21 }
  0x4b   :  { %703 = vmatprep.subr.bf16.mxu1 %v702_v26  ;;  %p808_p0 = pnand %p807_p13, %p801_p10 }
  0x4d   :  { %609 = vmatpush3.bf16.msra.mxu0 %v731_v16 }
  0x4e   :  { %610 = vmatprep.subr.bf16.mxu0 %v732_v20  ;;  %705 = vmatpush3.bf16.msra.mxu1 %v702_v26 }
  0x4f   :  { %707 = vmatprep.subr.bf16.mxu1 %v706_v33 }
  0x51   :  { %611 = vmatpush3.bf16.msra.mxu0 %v732_v20 }
  0x52   :  { %612 = vmatprep.subr.bf16.mxu0 %v733_v24  ;;  %709 = vmatpush3.bf16.msra.mxu1 %v706_v33 }
  0x53   :  { %711 = vmatprep.subr.bf16.mxu1 %v710_v37 }
  0x55   :  { %613 = vmatpush3.bf16.msra.mxu0 %v733_v24 }
  0x56   :  { %713 = vmatpush3.bf16.msra.mxu1 %v710_v37 }
  0x57   :  { %715 = vmatprep.subr.bf16.mxu1 %v714_v55 }
  0x58   :  { %615 = vmatmul.mubr.bf16.vlgmr.msra.gmra.mrb[0].mxu0 %v118_v32 }
  0x59   :  { %618 = vmatprep.mubr.bf16.mxu0 %v119_v34 }
  0x5a   :  { %717 = vmatpush3.bf16.msra.mxu1 %v714_v55 }
  0x60   :  { %619 = vmatmul.mubr.bf16.gmra.mrb[4].mxu0 %v120_v42 }
  0x61   :  { %622 = vmatprep.mubr.bf16.mxu0 %v121_v43 }
  0x68   :  { %623 = vmatmul.mubr.bf16.gmra.mrb[8].mxu0 %v122_v48 }
  0x69   :  { %626 = vmatprep.mubr.bf16.mxu0 %v123_v49 }
  0x70   :  { %627 = vmatmul.mubr.bf16.gmra.mrb[12].mxu0 %v124_v52 }
 0x12b   :  { %v616_v56 = vpop.f32.mrb[0].mxu0 }
 0x12c   :  { %v223_v57 = vpop.f32.mrb[1].mxu0 }
 0x12d   :  { %v617_v58 = vpop.f32.mrb[2].mxu0  ;;  %662 = vmatprep.mubr.f32.mxu1 %v223_v57 }
 0x12e   :  { %v226_v59 = vpop.f32.mrb[3].mxu0 }
 0x12f   :  { %663 = vmatmul.mubr.f32.vlgmr.msra.gmra.mrb[0].mxu1 %v226_v59 }
 0x130   :  { %665 = vmatprep.mubr.f32.mxu1 %v616_v56 }
 0x133   :  { %v620_v60 = vpop.f32.mrb[4].mxu0  ;;  %666 = vmatmul.mubr.f32.gmra.mrb[2].mxu1 %v617_v58 }
 0x134   :  { %v239_v61 = vpop.f32.mrb[5].mxu0 }
 0x135   :  { %v621_v62 = vpop.f32.mrb[6].mxu0  ;;  %668 = vmatprep.mubr.f32.mxu1 %v239_v61 }
 0x136   :  { %v242_v63 = vpop.f32.mrb[7].mxu0 }
 0x137   :  { %669 = vmatmul.mubr.f32.gmra.mrb[4].mxu1 %v242_v63 }
 0x138   :  { %671 = vmatprep.mubr.f32.mxu1 %v620_v60 }
 0x13b   :  { %v624_v0 = vpop.f32.mrb[8].mxu0  ;;  %672 = vmatmul.mubr.f32.gmra.mrb[6].mxu1 %v621_v62 }
 0x13c   :  { %v255_v1 = vpop.f32.mrb[9].mxu0 }
 0x13d   :  { %v625_v2 = vpop.f32.mrb[10].mxu0  ;;  %674 = vmatprep.mubr.f32.mxu1 %v255_v1 }
 0x13e   :  { %v258_v3 = vpop.f32.mrb[11].mxu0 }
 0x13f   :  { %675 = vmatmul.mubr.f32.gmra.mrb[8].mxu1 %v258_v3 }
 0x140   :  { %677 = vmatprep.mubr.f32.mxu1 %v624_v0 }
 0x143   :  { %v628_v4 = vpop.f32.mrb[12].mxu0  ;;  %678 = vmatmul.mubr.f32.gmra.mrb[10].mxu1 %v625_v2 }
 0x144   :  { %v271_v5 = vpop.f32.mrb[13].mxu0 }
 0x145   :  { %v629_v6 = vpop.f32.mrb[14].mxu0  ;;  %680 = vmatprep.mubr.f32.mxu1 %v271_v5 }
 0x146   :  { %v274_v7 = vpop.f32.mrb[15].mxu0 }
 0x147   :  { %681 = vmatmul.mubr.f32.gmra.mrb[12].mxu1 %v274_v7 }
 0x148   :  { %683 = vmatprep.mubr.f32.mxu1 %v628_v4 }
 0x14b   :  { %684 = vmatmul.mubr.f32.gmra.mrb[14].mxu1 %v629_v6 }
 0x202   :  { %v664_v9 = vpop.f32.mrb[0].mxu1 }
 0x203   :  { %v432_v10 = vadd.f32 %v664_v9, %v549_v8  ;;  %v426_v11 = vpop.f32.mrb[1].mxu1 }
 0x204   :  { %v427_v12 = vadd.f32 %v549_v8, %v426_v11 }
 0x205   :  { %506 = vst [vmem:[#allocation9 + $0x8] sm:$0xff] %v432_v10 }
 0x206   :  { %505 = vst [vmem:[#allocation9] sm:$0xff] %v427_v12  ;;  %v667_v13 = vpop.f32.mrb[2].mxu1 }
 0x207   :  { %v442_v14 = vadd.f32 %v667_v13, %v549_v8  ;;  %v436_v15 = vpop.f32.mrb[3].mxu1 }
 0x208   :  { %v437_v16 = vadd.f32 %v549_v8, %v436_v15 }
 0x209   :  { %508 = vst [vmem:[#allocation9 + $0x18] sm:$0xff] %v442_v14 }
 0x20a   :  { %507 = vst [vmem:[#allocation9 + $0x10] sm:$0xff] %v437_v16  ;;  %v670_v17 = vpop.f32.mrb[4].mxu1 }
 0x20b   :  { %v452_v18 = vadd.f32 %v670_v17, %v549_v8  ;;  %v446_v19 = vpop.f32.mrb[5].mxu1 }
 0x20c   :  { %v447_v20 = vadd.f32 %v549_v8, %v446_v19 }
 0x20d   :  { %510 = vst [vmem:[#allocation9 + $0x28] sm:$0xff] %v452_v18 }
 0x20e   :  { %509 = vst [vmem:[#allocation9 + $0x20] sm:$0xff] %v447_v20  ;;  %v673_v21 = vpop.f32.mrb[6].mxu1 }
 0x20f   :  { %v462_v22 = vadd.f32 %v673_v21, %v549_v8  ;;  %v456_v23 = vpop.f32.mrb[7].mxu1 }
 0x210   :  { %v457_v24 = vadd.f32 %v549_v8, %v456_v23 }
 0x211   :  { %512 = vst [vmem:[#allocation9 + $0x38] sm:$0xff] %v462_v22 }
 0x212   :  { %511 = vst [vmem:[#allocation9 + $0x30] sm:$0xff] %v457_v24  ;;  %v676_v25 = vpop.f32.mrb[8].mxu1 }
 0x213   :  { %v472_v26 = vadd.f32 %v676_v25, %v549_v8  ;;  %v466_v27 = vpop.f32.mrb[9].mxu1 }
 0x214   :  { %v467_v28 = vadd.f32 %v549_v8, %v466_v27 }
 0x215   :  { %514 = vst [vmem:[#allocation9 + $0x48] sm:$0xff] %v472_v26 }
 0x216   :  { %513 = vst [vmem:[#allocation9 + $0x40] sm:$0xff] %v467_v28  ;;  %v679_v29 = vpop.f32.mrb[10].mxu1 }
 0x217   :  { %v482_v30 = vadd.f32 %v679_v29, %v549_v8  ;;  %v476_v31 = vpop.f32.mrb[11].mxu1 }
 0x218   :  { %v477_v32 = vadd.f32 %v549_v8, %v476_v31 }
 0x219   :  { %516 = vst [vmem:[#allocation9 + $0x58] sm:$0xff] %v482_v30 }
 0x21a   :  { %515 = vst [vmem:[#allocation9 + $0x50] sm:$0xff] %v477_v32  ;;  %v682_v33 = vpop.f32.mrb[12].mxu1 }
 0x21b   :  { %v492_v34 = vadd.f32 %v682_v33, %v549_v8  ;;  %v486_v35 = vpop.f32.mrb[13].mxu1 }
 0x21c   :  { %v487_v36 = vadd.f32 %v549_v8, %v486_v35 }
 0x21d   :  { %518 = vst [vmem:[#allocation9 + $0x68] sm:$0xff] %v492_v34 }
 0x21e   :  { %517 = vst [vmem:[#allocation9 + $0x60] sm:$0xff] %v487_v36  ;;  %v685_v37 = vpop.f32.mrb[14].mxu1 }
 0x21f   :  { %v502_v38 = vadd.f32 %v685_v37, %v549_v8  ;;  %v496_v39 = vpop.f32.mrb[15].mxu1 }
 0x220   :  { %v497_v40 = vadd.f32 %v549_v8, %v496_v39 }
 0x221   :  { %520 = vst [vmem:[#allocation9 + $0x78] sm:$0xff] %v502_v38 }
 0x222   :  { %519 = vst [vmem:[#allocation9 + $0x70] sm:$0xff] %v497_v40 }
 0x223   :  { %811 = shalt.err (!%p808_p0)
}
 0x224   :  { %s812_s6 = scalar_lea.hbm %s925_s4, 2048 }
 0x225   :  { %p813_p1 = scmp.ne.s32.totalorder %s925_s4, %s812_s6  ;;  %p816_p2 = scmp.lt.u32.totalorder %s812_s6, %s925_s4 }
 0x227   :  { %p818_p3 = pnand %p816_p2, %p813_p1 }
 0x229   :  { %821 = shalt.err (!%p818_p3)
}
 0x22a   :  { %532 = dma.vmem_to_hbm [thread:$0]  %s527_s28, 2048, %s925_s4, [#allocation5], %s832_s1, %s832_s1, %s833_s13  }
 0x22b   :  { %826 = dma.done.wait [#allocation5], 2048  }
 0x22c   :  { %827 = vsyncadd [#allocation5], 4294965248 }
 0x22d   :  { %536 = vsyncpa [#allocation4], 1 }
 0x22e   :  { %537 = vsyncpa [#allocation7], 1 }
 0x22f   :  { %538 = vsyncpa [#allocation5], 1 }

</bundles_post_ra>
